<compile_context>
chip_gen: v6e
topology: v6e:2x2x1
jax: 0.10.0
libtpu: 0.0.40
codegen_flags: <defaults>
</compile_context>

<pallas_src>
import jax
import jax.numpy as jnp
from jax import lax
from jax.experimental import pallas as pl
from jax.experimental.pallas import tpu as pltpu

LANES = 128
_CHUNK = 256  # rows per in-kernel chunk (keeps live ranges bounded)


# ----------------------------------------------------------------------------
# Generation-aware defaults
# ----------------------------------------------------------------------------
def _device_kind():
    try:
        return jax.devices()[0].device_kind.lower()
    except Exception:
        return ""


def _default_num_cores(kind):
    # 2 TensorCores per Pallas device on v4 / v5p megacore and v7x; 1 on v5e/v6e.
    # TODO(synk): on v7x verify the leading "parallel" axis really shards across
    # both TensorCores; switch that axis to pltpu.CORE_PARALLEL if it does not.
    if "v7" in kind or "v4" in kind or "v5p" in kind:
        return 2
    return 1


def _default_block_rows(kind):
    # ~2 MiB f32 blocks on v7x (per-step overhead <10% at ~3.2 TB/s per TC),
    # ~1 MiB elsewhere (v5e: well inside the 16 MiB scoped-VMEM default even
    # with triple buffering).
    return 4096 if "v7" in kind else 2048


# ----------------------------------------------------------------------------
# Kernel
# ----------------------------------------------------------------------------
def _make_kernel(*, inner_steps, block_rows, rows, chunk, ragged):
    """Build a kernel specialized on the (static) launch geometry."""
    n_full, rem = divmod(block_rows, chunk)

    def accum(p_ref, t_ref, w_ref, acc_ref, r0, n, bound):
        """acc += column-wise sum over rows [r0, r0+n) of |p - t| * w."""
        p = p_ref[pl.ds(r0, n), :].astype(jnp.float32)
        t = t_ref[pl.ds(r0, n), :].astype(jnp.float32)
        w = w_ref[pl.ds(r0, n), :].astype(jnp.float32)
        wd = jnp.abs(p - t) * w
        if bound is not None:
            # Select (NOT multiply-by-zero-weight): rows past `bound` may hold
            # garbage/NaN from a partially valid DMA.
            rid = lax.broadcasted_iota(jnp.int32, (n, LANES), 0)
            wd = jnp.where(rid < bound, wd, 0.0)
        if n % 8:
            wd = jnp.concatenate(
                [wd, jnp.zeros(((-n) % 8, LANES), jnp.float32)], axis=0)
        # Reduce only the leading 8-row-group axis: pure VPU vreg adds.
        acc_ref[...] += wd.reshape(-1, 8, LANES).sum(axis=0)

    def kernel(p_ref, t_ref, w_ref, out_ref, acc_ref):
        c = pl.program_id(0)  # core axis ("parallel")
        j = pl.program_id(1)  # reduction axis ("arbitrary")

        @pl.when(j == 0)
        def _():
            acc_ref[...] = jnp.zeros_like(acc_ref)

        # Nominal start row of this block; may exceed `rows` for the clamped
        # tail blocks of an uneven core split (handled by the masked path).
        start_row = (c * inner_steps + j) * block_rows

        def run(masked):
            def do(r0, n):
                bound = (rows - start_row - r0) if masked else None
                accum(p_ref, t_ref, w_ref, acc_ref, r0, n, bound)

            if n_full:
                def body(k, carry):
                    do(pl.multiple_of(k * chunk, chunk), chunk)
                    return carry
                lax.fori_loop(0, n_full, body, 0, unroll=True)
            if rem:
                do(n_full * chunk, rem)

        if ragged:
            @pl.when(start_row + block_rows <= rows)
            def _():
                run(False)          # fully valid block: no mask cost

            @pl.when(start_row + block_rows > rows)
            def _():
                run(True)           # partial / fully-OOB block: masked
        else:
            run(False)

        @pl.when(j == inner_steps - 1)
        def _():
            out_ref[...] = acc_ref[...]   # one (8,128) partial per core

    return kernel


# ----------------------------------------------------------------------------
# pallas_call wrapper
# ----------------------------------------------------------------------------
def _weighted_l1_partials(p2, t2, w2, rows, *, block_rows, num_cores,
                          chunk=_CHUNK):
    num_blocks = pl.cdiv(rows, block_rows)
    num_cores = max(1, min(num_cores, num_blocks))
    inner_steps = pl.cdiv(num_blocks, num_cores)
    ragged = num_cores * inner_steps * block_rows != rows

    def row_map(c, j):
        b = c * inner_steps + j
        # Clamp so a fully out-of-range tail step never issues an OOB DMA;
        # its contribution is masked to zero in-kernel.
        return (jnp.minimum(b, num_blocks - 1), 0)

    buffered = {"pipeline_mode": pl.Buffered(3)} if inner_steps >= 3 else {}
    in_spec = pl.BlockSpec((block_rows, LANES), row_map, **buffered)

    kernel = _make_kernel(inner_steps=inner_steps, block_rows=block_rows,
                          rows=rows, chunk=chunk, ragged=ragged)

    return pl.pallas_call(
        kernel,
        out_shape=jax.ShapeDtypeStruct((num_cores * 8, LANES), jnp.float32),
        grid_spec=pltpu.PrefetchScalarGridSpec(
            num_scalar_prefetch=0,
            grid=(num_cores, inner_steps),
            in_specs=[in_spec, in_spec, in_spec],
            out_specs=pl.BlockSpec((8, LANES), lambda c, j: (c, 0)),
            scratch_shapes=[pltpu.VMEM((8, LANES), jnp.float32)],
        ),
        compiler_params=pltpu.CompilerParams(
            dimension_semantics=("parallel", "arbitrary")),
    )(p2, t2, w2)


def _as_lane_slab(x):
    """(N, D) -> (ceil(N*D/128), 128).  A copy happens only when N*D % 128 != 0."""
    flat = x.reshape(-1)
    pad = (-flat.shape[0]) % LANES
    if pad:
        # TODO(synk): single unavoidable pad-copy when N*D is not lane-aligned;
        # the zero tail carries zero weight in the cached slab so it adds nothing.
        flat = jnp.pad(flat, (0, pad))
    return flat.reshape(-1, LANES)


# ----------------------------------------------------------------------------
# Module
# ----------------------------------------------------------------------------
class WeightedL1Loss:
    """JAX/Pallas port of the PyTorch WeightedL1Loss module."""

    def __init__(self, links_pc):
        # links_pc: dict[str, array of shape (n_i, d)] — only shapes matter here.
        self.links_pc = links_pc
        self.num_links = len(links_pc)
        self.weights = self._calculate_weights(links_pc)   # (N,) f32
        self._n_points = int(self.weights.shape[0])
        self._slab_cache = {}   # (d, dtype) -> cached (rows, 128) weight slab
        kind = _device_kind()
        self._num_cores = _default_num_cores(kind)
        self._block_rows = _default_block_rows(kind)

    @staticmethod
    def _calculate_weights(links_pc):
        parts = []
        for link_pc in links_pc.values():
            n = int(link_pc.shape[0])
            parts.append(jnp.full((n,), 1.0 / n, dtype=jnp.float32))
        return jnp.concatenate(parts, axis=0)

    def _weight_slab(self, d, dtype):
        key = (int(d), jnp.dtype(dtype).name)
        slab = self._slab_cache.get(key)
        if slab is None:
            total = self._n_points * d
            pad = (-total) % LANES
            w = jnp.broadcast_to(self.weights[:, None],
                                 (self._n_points, d)).reshape(-1)
            if pad:
                w = jnp.pad(w, (0, pad))
            # Stored in pred.dtype (bf16 inputs -> bf16 weight stream); built once.
            slab = w.astype(dtype).reshape(-1, LANES)
            self._slab_cache[key] = slab
        return slab

    def __call__(self, pred, target, *, block_rows=None, num_cores=None,
                 chunk=_CHUNK):
        n, d = pred.shape
        assert n == self._n_points and target.shape == pred.shape
        total = n * d
        rows = pl.cdiv(total, LANES)

        block_rows = block_rows or self._block_rows
        num_cores = num_cores or self._num_cores
        if rows <= block_rows:
            # Small-input fast path: one full-extent block, single grid step.
            block_rows, num_cores = rows, 1

        w2 = self._weight_slab(d, pred.dtype)
        p2 = _as_lane_slab(pred)
        t2 = _as_lane_slab(target)

        partials = _weighted_l1_partials(
            p2, t2, w2, rows,
            block_rows=block_rows, num_cores=num_cores, chunk=chunk)
        return jnp.sum(partials) / jnp.float32(self.num_links)


# ----------------------------------------------------------------------------
# Reference + self-test
# ----------------------------------------------------------------------------
def _reference(pred, target, weights, num_links):
    diff = jnp.abs(pred.astype(jnp.float32) - target.astype(jnp.float32))
    return jnp.sum(diff * weights[:, None]) / num_links


if __name__ == "__main__":
    key = jax.random.PRNGKey(0)
    k1, k2, k3, k4 = jax.random.split(key, 4)
    d = 3

    # --- Test 1: small point cloud (3 links, N=128) — small-input fast path.
    link_sizes = (40, 60, 28)
    links_pc = {f"link_{i}": jnp.zeros((sz, d), jnp.float32)
                for i, sz in enumerate(link_sizes)}
    loss_mod = WeightedL1Loss(links_pc)

    n = sum(link_sizes)
    pred = jax.random.normal(k1, (n, d), dtype=jnp.float32)
    target = jax.random.normal(k2, (n, d), dtype=jnp.float32)

    loss = jax.block_until_ready(loss_mod(pred, target))
    ref = _reference(pred, target, loss_mod.weights, loss_mod.num_links)
    assert jnp.allclose(loss, ref, rtol=1e-5, atol=1e-5), (loss, ref)

    # --- Test 2: exercise the general path (multi-block, 2-way core split with
    # a clamped/masked tail block, unrolled in-kernel chunk loop) using tiny
    # override tiles so shapes stay small.
    link_sizes2 = (500, 300, 200)   # N = 1000, D = 3 -> rows = 24
    links_pc2 = {f"l{i}": jnp.zeros((sz, d), jnp.float32)
                 for i, sz in enumerate(link_sizes2)}
    loss_mod2 = WeightedL1Loss(links_pc2)

    n2 = sum(link_sizes2)
    pred2 = jax.random.normal(k3, (n2, d), dtype=jnp.float32)
    target2 = jax.random.normal(k4, (n2, d), dtype=jnp.float32)

    loss2 = jax.block_until_ready(
        loss_mod2(pred2, target2, block_rows=16, num_cores=2, chunk=8))
    ref2 = _reference(pred2, target2, loss_mod2.weights, loss_mod2.num_links)
    assert jnp.allclose(loss2, ref2, rtol=1e-5, atol=1e-5), (loss2, ref2)

    print("KERNEL_OK")
</pallas_src>

<mosaic_0001>
module attributes {stable_mosaic.version = 11 : i64} {
  func.func @kernel(%arg0: i32, %arg1: i32, %arg2: memref<3x128xf32, #tpu.memory_space<vmem>>, %arg3: memref<3x128xf32, #tpu.memory_space<vmem>>, %arg4: memref<3x128xf32, #tpu.memory_space<vmem>>, %arg5: memref<8x128xf32, #tpu.memory_space<vmem>>, %arg6: memref<8x128xf32, #tpu.memory_space<vmem>>) attributes {dimension_semantics = [#tpu.dimension_semantics<parallel>, #tpu.dimension_semantics<arbitrary>], iteration_bounds = array<i64: 1, 1>, scalar_prefetch = 0 : i64, scratch_operands = 1 : i64, tpu.core_type = #tpu.core_type<tc>, window_params = [{transform_indices = @transform_0, window_bounds = array<i64: 3, 128>}, {transform_indices = @transform_1, window_bounds = array<i64: 3, 128>}, {transform_indices = @transform_2, window_bounds = array<i64: 3, 128>}, {transform_indices = @transform_3, window_bounds = array<i64: 8, 128>}]} {
    %c0_i32 = arith.constant 0 : i32
    %0 = arith.cmpi eq, %arg1, %c0_i32 : i32
    %1 = arith.extui %0 : i1 to i32
    %c0_i32_0 = arith.constant 0 : i32
    %2 = arith.cmpi ne, %1, %c0_i32_0 : i32
    scf.if %2 {
      %cst_13 = arith.constant 0.000000e+00 : f32
      %19 = vector.broadcast %cst_13 : f32 to vector<8x128xf32>
      %c0_14 = arith.constant 0 : index
      %c0_15 = arith.constant 0 : index
      %20 = vector.load %arg6[%c0_14, %c0_15] : memref<8x128xf32, #tpu.memory_space<vmem>>, vector<8x128xf32>
      tpu.vector_store %arg6[%c0_14, %c0_15], %19 {strides = array<i32>} : memref<8x128xf32, #tpu.memory_space<vmem>>, vector<8x128xf32>,
    } else {
    }
    %c0 = arith.constant 0 : index
    %c0_1 = arith.constant 0 : index
    %3 = vector.load %arg2[%c0, %c0_1] : memref<3x128xf32, #tpu.memory_space<vmem>>, vector<3x128xf32>
    %c0_2 = arith.constant 0 : index
    %c0_3 = arith.constant 0 : index
    %4 = vector.load %arg3[%c0_2, %c0_3] : memref<3x128xf32, #tpu.memory_space<vmem>>, vector<3x128xf32>
    %c0_4 = arith.constant 0 : index
    %c0_5 = arith.constant 0 : index
    %5 = vector.load %arg4[%c0_4, %c0_5] : memref<3x128xf32, #tpu.memory_space<vmem>>, vector<3x128xf32>
    %6 = arith.subf %3, %4 : vector<3x128xf32>
    %7 = math.absf %6 : vector<3x128xf32>
    %8 = arith.mulf %7, %5 : vector<3x128xf32>
    %cst = arith.constant 0.000000e+00 : f32
    %9 = vector.broadcast %cst : f32 to vector<5x128xf32>
    %10 = tpu.concatenate %8, %9 in 0 : vector<3x128xf32>, vector<5x128xf32> -> vector<8x128xf32>
    %c0_6 = arith.constant 0 : index
    %c0_7 = arith.constant 0 : index
    %11 = vector.load %arg6[%c0_6, %c0_7] : memref<8x128xf32, #tpu.memory_space<vmem>>, vector<8x128xf32>
    %12 = vector.shape_cast %10 : vector<8x128xf32> to vector<1x8x128xf32>
    %cst_8 = arith.constant dense<0.000000e+00> : vector<8x128xf32>
    %13 = vector.multi_reduction <add>, %12, %cst_8 [0] : vector<1x8x128xf32> to vector<8x128xf32>
    %14 = arith.addf %11, %13 : vector<8x128xf32>
    %c0_9 = arith.constant 0 : index
    %c0_10 = arith.constant 0 : index
    %15 = vector.load %arg6[%c0_9, %c0_10] : memref<8x128xf32, #tpu.memory_space<vmem>>, vector<8x128xf32>
    tpu.vector_store %arg6[%c0_9, %c0_10], %14 {strides = array<i32>} : memref<8x128xf32, #tpu.memory_space<vmem>>, vector<8x128xf32>,
    %c0_i32_11 = arith.constant 0 : i32
    %16 = arith.cmpi eq, %arg1, %c0_i32_11 : i32
    %17 = arith.extui %16 : i1 to i32
    %c0_i32_12 = arith.constant 0 : i32
    %18 = arith.cmpi ne, %17, %c0_i32_12 : i32
    scf.if %18 {
      %c0_13 = arith.constant 0 : index
      %c0_14 = arith.constant 0 : index
      %19 = vector.load %arg6[%c0_13, %c0_14] : memref<8x128xf32, #tpu.memory_space<vmem>>, vector<8x128xf32>
      %c0_15 = arith.constant 0 : index
      %c0_16 = arith.constant 0 : index
      %20 = vector.load %arg5[%c0_15, %c0_16] : memref<8x128xf32, #tpu.memory_space<vmem>>, vector<8x128xf32>
      tpu.vector_store %arg5[%c0_15, %c0_16], %19 {strides = array<i32>} : memref<8x128xf32, #tpu.memory_space<vmem>>, vector<8x128xf32>,
    } else {
    }
    return
  }
  func.func @transform_0(%arg0: i32, %arg1: i32) -> (i32, i32) {
    %c1_i32 = arith.constant 1 : i32
    %0 = arith.muli %arg0, %c1_i32 : i32
    %1 = arith.addi %0, %arg1 : i32
    %c0_i32 = arith.constant 0 : i32
    %2 = arith.minsi %1, %c0_i32 : i32
    %c0_i32_0 = arith.constant 0 : i32
    %c0_i32_1 = arith.constant 0 : i32
    return %2, %c0_i32_0 : i32, i32
  }
  func.func @transform_1(%arg0: i32, %arg1: i32) -> (i32, i32) {
    %c1_i32 = arith.constant 1 : i32
    %0 = arith.muli %arg0, %c1_i32 : i32
    %1 = arith.addi %0, %arg1 : i32
    %c0_i32 = arith.constant 0 : i32
    %2 = arith.minsi %1, %c0_i32 : i32
    %c0_i32_0 = arith.constant 0 : i32
    %c0_i32_1 = arith.constant 0 : i32
    return %2, %c0_i32_0 : i32, i32
  }
  func.func @transform_2(%arg0: i32, %arg1: i32) -> (i32, i32) {
    %c1_i32 = arith.constant 1 : i32
    %0 = arith.muli %arg0, %c1_i32 : i32
    %1 = arith.addi %0, %arg1 : i32
    %c0_i32 = arith.constant 0 : i32
    %2 = arith.minsi %1, %c0_i32 : i32
    %c0_i32_0 = arith.constant 0 : i32
    %c0_i32_1 = arith.constant 0 : i32
    return %2, %c0_i32_0 : i32, i32
  }
  func.func @transform_3(%arg0: i32, %arg1: i32) -> (i32, i32) {
    %c0_i32 = arith.constant 0 : i32
    %c0_i32_0 = arith.constant 0 : i32
    return %arg0, %c0_i32 : i32, i32
  }
}

</mosaic_0001>

<bundles_post_ra>
// kernel: tpu_custom_call.1
= control target key start
LH: loop header
LB: loop body
LE: loop exit
PB: predicated region body
PF: predicated region fallthrough
CT: control target
= control target key end

     0   :  { %8 = vsyncpa [#allocation4], 0  ;;  %s244_s0 = inlined_call_operand.hbm [shape: f32[3,128], index: 0, kind: input, shape index: {}]   ;;  %s245_s1 = inlined_call_operand.hbm [shape: f32[3,128], index: 1, kind: input, shape index: {}]   ;;  %s246_s2 = inlined_call_operand.hbm [shape: f32[3,128], index: 2, kind: input, shape index: {}]   ;;  %s247_s3 = inlined_call_operand.hbm [shape: f32[8,128], index: 3, kind: output, shape index: {}]  }
   0x1   :  { %9 = vsyncpa [#allocation7], 0 }
   0x2   :  { %10 = vsyncpa [#allocation5], 0  ;;  %s208_s12 = smov [#allocation6]   ;;  %s209_s14 = smov [#allocation3]  }
   0x3   :  { %s37_s13 = sshll.u32 %s208_s12, 4  ;;  %s22_s15 = sshll.u32 %s209_s14, 4  ;;  %s38_s13 = int_to_ptr.vmem [resolvable:$true] %s37_s13  ;;  %s23_s15 = int_to_ptr.vmem [resolvable:$true] %s22_s15 }
   0x4   :  { %s130_s16 = scalar_lea.vmem %s38_s13, 64  ;;  %p135_p1 = scmp.lt.s32.totalorder %s38_s13, %s38_s13 }
   0x5   :  { %p131_p0 = scmp.ne.s32.totalorder %s38_s13, %s130_s16  ;;  %p136_p2 = scmp.lt.s32.totalorder %s130_s16, %s130_s16 }
   0x7   :  { %p137_p3 = por %p136_p2, %p135_p1 }
   0x9   :  { %p138_p4 = pnand %p137_p3, %p131_p0 }
   0xb   :  { %141 = shalt.err (!%p138_p4)
}
   0xc   :  { %40 = dma.hbm_to_vmem [thread:$0]  %s245_s1, 64, %s38_s13, [#allocation7]  }
   0xd   :  { %s150_s19 = scalar_lea.vmem %s23_s15, 64  ;;  %p155_p6 = scmp.lt.s32.totalorder %s23_s15, %s23_s15 }
   0xe   :  { %p151_p5 = scmp.ne.s32.totalorder %s23_s15, %s150_s19  ;;  %p156_p7 = scmp.lt.s32.totalorder %s150_s19, %s150_s19 }
  0x10   :  { %p157_p8 = por %p156_p7, %p155_p6 }
  0x12   :  { %p158_p9 = pnand %p157_p8, %p151_p5 }
  0x14   :  { %161 = shalt.err (!%p158_p9)
}
  0x15   :  { %25 = dma.hbm_to_vmem [thread:$0]  %s244_s0, 64, %s23_s15, [#allocation4]  }
  0x16   :  { %s210_s22 = smov [#allocation8]  }
  0x17   :  { %s52_s23 = sshll.u32 %s210_s22, 4  ;;  %s53_s23 = int_to_ptr.vmem [resolvable:$true] %s52_s23 }
  0x18   :  { %s170_s24 = scalar_lea.vmem %s53_s23, 64  ;;  %p175_p11 = scmp.lt.s32.totalorder %s53_s23, %s53_s23 }
  0x19   :  { %p171_p10 = scmp.ne.s32.totalorder %s53_s23, %s170_s24  ;;  %p176_p12 = scmp.lt.s32.totalorder %s170_s24, %s170_s24 }
  0x1b   :  { %p177_p13 = por %p176_p12, %p175_p11 }
  0x1d   :  { %p178_p0 = pnand %p177_p13, %p171_p10 }
  0x1f   :  { %181 = shalt.err (!%p178_p0)
}
  0x20   :  { %55 = dma.hbm_to_vmem [thread:$0]  %s246_s2, 64, %s53_s23, [#allocation7]  }
  0x21   :  { %202 = dma.done.wait [#allocation4], 64  }
  0x22   :  { %203 = vsyncadd [#allocation4], 4294967232 }
  0x23   :  { %204 = dma.done.wait [#allocation7], 128  }
  0x24   :  { %205 = vsyncadd [#allocation7], 4294967168  ;;  %v79_v0 = vld [vmem:[#allocation3] sm:$0x7]  ;;  %v80_v1 = vld [vmem:[#allocation6] sm:$0x7] }
  0x25   :  { %v82_v2 = vsub.f32 %v79_v0, %v80_v1  ;;  %v81_v3 = vld [vmem:[#allocation8] sm:$0x7]  ;;  %s211_s0 = smov [#allocation9]   ;;  %vm85_vm0 = vcmask 1042432  }
  0x26   :  { %s102_s26 = sshll.u32 %s211_s0, 4  ;;  %s103_s26 = int_to_ptr.vmem [resolvable:$true] %s102_s26 }
  0x27   :  { %v83_v4 = vand.u32 2147483647, %v82_v2  ;;  %s182_s27 = scalar_lea.vmem %s103_s26, 128  ;;  %p187_p2 = scmp.lt.s32.totalorder %s103_s26, %s103_s26 }
  0x28   :  { %p183_p1 = scmp.ne.s32.totalorder %s103_s26, %s182_s27  ;;  %p188_p3 = scmp.lt.s32.totalorder %s182_s27, %s182_s27 }
  0x29   :  { %v84_v5 = vmul.f32 %v83_v4, %v81_v3 }
  0x2a   :  { %p189_p4 = por %p188_p3, %p187_p2 }
  0x2b   :  { %v86_v6 = vsel %vm85_vm0, %v84_v5, 0.0 }
  0x2c   :  { %95 = vst [vmem:[#allocation9] sm:$0xff] %v86_v6  ;;  %p190_p5 = pnand %p189_p4, %p183_p1 }
  0x2e   :  { %193 = shalt.err (!%p190_p5)
}
  0x2f   :  { %105 = dma.vmem_to_hbm [thread:$0]  %s103_s26, 128, %s247_s3, [#allocation5]  }
  0x30   :  { %206 = dma.done.wait [#allocation5], 128  }
  0x31   :  { %207 = vsyncadd [#allocation5], 4294967168 }
  0x32   :  { %109 = vsyncpa [#allocation4], 1 }
  0x33   :  { %110 = vsyncpa [#allocation7], 1 }
  0x34   :  { %111 = vsyncpa [#allocation5], 1 }

</bundles_post_ra>
